<compile_context>
chip_gen: v5e
topology: v5e:2x2
jax: 0.10.0
libtpu: 0.0.40
codegen_flags: <defaults>
</compile_context>

<pallas_src>
import functools

import jax
import jax.numpy as jnp
from jax.experimental import pallas as pl
from jax.experimental.pallas import tpu as pltpu


def _round_up(x, m):
    return ((x + m - 1) // m) * m


def classify_kernel(x_ref, w_ref, b_ref, o_ref, acc_ref, *, inv_hw):
    # x_ref: (Nt, C1p, HWt)   w_ref: (C1p, C2p)   b_ref: (1, C2p)
    # o_ref: (Nt, C2p)        acc_ref: (Nt, C1p) f32 scratch
    k = pl.program_id(1)

    @pl.when(k == 0)
    def _():
        acc_ref[...] = jnp.zeros_like(acc_ref)

    # Steady-state loop: pure DMA + reduce (sum, scale applied at finalize so
    # partial/padded HW tiles stay correct).
    x = x_ref[...].astype(jnp.float32)
    acc_ref[...] += jnp.sum(x, axis=-1)

    @pl.when(k == pl.num_programs(1) - 1)
    def _():
        pooled = acc_ref[...] * inv_hw                              # (Nt, C1p)
        out = jnp.dot(pooled, w_ref[...].astype(jnp.float32),
                      preferred_element_type=jnp.float32)           # 1x1 conv
        out = out + b_ref[...].astype(jnp.float32)
        o_ref[...] = out.astype(o_ref.dtype)


def _choose_tiles(n, c1_pad, hw, itemsize):
    # Batch tile (multiple of 8 so the (Nt, C2p) output block is sublane-clean).
    nt = _round_up(n, 8) if n <= 64 else 64
    # HW tile: target up to 1024 lanes, but keep one x buffer <= ~8 MiB so the
    # double-buffered stream stays well inside every generation's VMEM
    # (v7x 64 MiB physical / 32 MiB scoped default, v5e 16 MiB scoped default).
    budget = 8 * 1024 * 1024
    hwt = min(_round_up(hw, 128), 1024)
    while nt * c1_pad * hwt * itemsize > budget and hwt > 128:
        hwt -= 128
    while nt * c1_pad * hwt * itemsize > budget and nt > 8:
        nt -= 8
    return nt, hwt


def classify(x, weight, bias):
    """x: (N, C1, H, W) NCHW; weight: (C2, C1, 1, 1); bias: (C2,) -> (N, C2)."""
    N, C1, H, W = x.shape
    C2 = weight.shape[0]
    HW = H * W

    itemsize = jnp.dtype(x.dtype).itemsize
    sublane = 8 if itemsize >= 4 else (16 if itemsize == 2 else 32)
    C1p = _round_up(C1, sublane)
    C2p = _round_up(C2, 128)

    Nt, HWt = _choose_tiles(N, C1p, HW, itemsize)
    Np = _round_up(N, Nt)
    HWp = _round_up(HW, HWt)

    # Glue reshapes / zero padding (plain JAX).  Keep x in its NATIVE dtype:
    # the kernel upcasts to f32 internally, so bf16 activations stream at half
    # the HBM traffic.
    x3 = x.reshape(N, C1, HW)
    x3 = jnp.pad(x3, ((0, Np - N), (0, C1p - C1), (0, HWp - HW)))
    w2 = weight.reshape(C2, C1).T                                   # (C1, C2)
    w2 = jnp.pad(w2, ((0, C1p - C1), (0, C2p - C2)))
    b2 = jnp.pad(bias.reshape(1, C2), ((0, 0), (0, C2p - C2)))

    grid = (Np // Nt, HWp // HWt)

    # VMEM budget hint: double-buffered x tiles + params + output + accumulator.
    vmem_need = (2 * Nt * C1p * HWt * itemsize
                 + 2 * C1p * C2p * jnp.dtype(w2.dtype).itemsize
                 + 2 * Nt * C2p * itemsize
                 + Nt * C1p * 4)
    vmem_limit = min(max(int(vmem_need * 1.5) + (1 << 20), 16 * 1024 * 1024),
                     48 * 1024 * 1024)

    cost = pl.CostEstimate(
        flops=2 * N * C1 * C2 + N * C1 * HW,
        transcendentals=0,
        bytes_accessed=(x3.size * itemsize
                        + w2.size * jnp.dtype(w2.dtype).itemsize
                        + b2.size * jnp.dtype(b2.dtype).itemsize
                        + Np * C2p * itemsize),
    )

    out_padded = pl.pallas_call(
        functools.partial(classify_kernel, inv_hw=1.0 / float(HW)),
        out_shape=jax.ShapeDtypeStruct((Np, C2p), x.dtype),
        grid_spec=pltpu.PrefetchScalarGridSpec(
            num_scalar_prefetch=0,
            grid=grid,
            in_specs=[
                pl.BlockSpec((Nt, C1p, HWt), lambda n, k: (n, 0, k)),
                pl.BlockSpec((C1p, C2p), lambda n, k: (0, 0)),
                pl.BlockSpec((1, C2p), lambda n, k: (0, 0)),
            ],
            out_specs=pl.BlockSpec((Nt, C2p), lambda n, k: (n, 0)),
            scratch_shapes=[pltpu.VMEM((Nt, C1p), jnp.float32)],
        ),
        compiler_params=pltpu.CompilerParams(
            dimension_semantics=("parallel", "arbitrary"),
            vmem_limit_bytes=vmem_limit,
        ),
        cost_estimate=cost,
    )(x3, w2, b2)

    return out_padded[:N, :C2]


if __name__ == "__main__":
    # Small shapes consistent with the module: batch=2, c1=4, spatial=16x16, c2=8
    N, C1, H, W, C2 = 2, 4, 16, 16, 8

    key = jax.random.PRNGKey(0)
    kx, kw, kb = jax.random.split(key, 3)

    x = jax.random.normal(kx, (N, C1, H, W), dtype=jnp.float32)
    # Conv2d(c1, c2, k=1) params: weight (c2, c1, 1, 1), bias (c2,)
    weight = jax.random.normal(kw, (C2, C1, 1, 1), dtype=jnp.float32) * 0.1
    bias = jax.random.normal(kb, (C2,), dtype=jnp.float32) * 0.1

    out = classify(x, weight, bias)
    out = jax.block_until_ready(out)

    # Reference (plain JAX) to verify semantics
    pooled_ref = jnp.mean(x, axis=(2, 3))                       # (N, C1)
    ref = pooled_ref @ weight.reshape(C2, C1).T + bias          # (N, C2)
    assert out.shape == (N, C2)
    assert jnp.allclose(out, ref, atol=1e-5, rtol=1e-5)

    print("KERNEL_OK")
</pallas_src>

<mosaic_0001>
module attributes {stable_mosaic.version = 11 : i64} {
  func.func @classify_kernel(%arg0: i32, %arg1: i32, %arg2: memref<8x8x256xf32, #tpu.memory_space<vmem>>, %arg3: memref<8x128xf32, #tpu.memory_space<vmem>>, %arg4: memref<1x128xf32, #tpu.memory_space<vmem>>, %arg5: memref<8x128xf32, #tpu.memory_space<vmem>>, %arg6: memref<8x8xf32, #tpu.memory_space<vmem>>) attributes {dimension_semantics = [#tpu.dimension_semantics<parallel>, #tpu.dimension_semantics<arbitrary>], iteration_bounds = array<i64: 1, 1>, scalar_prefetch = 0 : i64, scratch_operands = 1 : i64, tpu.core_type = #tpu.core_type<tc>, window_params = [{transform_indices = @transform_0, window_bounds = array<i64: 8, 8, 256>}, {pipeline_mode = #tpu.pipeline_mode<synchronous>, transform_indices = @transform_1, window_bounds = array<i64: 8, 128>}, {pipeline_mode = #tpu.pipeline_mode<synchronous>, transform_indices = @transform_2, window_bounds = array<i64: 1, 128>}, {transform_indices = @transform_3, window_bounds = array<i64: 8, 128>}]} {
    %c0_i32 = arith.constant 0 : i32
    %0 = arith.cmpi eq, %arg1, %c0_i32 : i32
    %1 = arith.extui %0 : i1 to i32
    %c0_i32_0 = arith.constant 0 : i32
    %2 = arith.cmpi ne, %1, %c0_i32_0 : i32
    scf.if %2 {
      %cst_9 = arith.constant 0.000000e+00 : f32
      %11 = vector.broadcast %cst_9 : f32 to vector<8x8xf32>
      %c0_10 = arith.constant 0 : index
      %c0_11 = arith.constant 0 : index
      %12 = vector.load %arg6[%c0_10, %c0_11] : memref<8x8xf32, #tpu.memory_space<vmem>>, vector<8x8xf32>
      tpu.vector_store %arg6[%c0_10, %c0_11], %11 {strides = array<i32>} : memref<8x8xf32, #tpu.memory_space<vmem>>, vector<8x8xf32>,
    } else {
    }
    %c0 = arith.constant 0 : index
    %c0_1 = arith.constant 0 : index
    %c0_2 = arith.constant 0 : index
    %3 = vector.load %arg2[%c0, %c0_1, %c0_2] : memref<8x8x256xf32, #tpu.memory_space<vmem>>, vector<8x8x256xf32>
    %c0_3 = arith.constant 0 : index
    %c0_4 = arith.constant 0 : index
    %4 = vector.load %arg6[%c0_3, %c0_4] : memref<8x8xf32, #tpu.memory_space<vmem>>, vector<8x8xf32>
    %cst = arith.constant dense<0.000000e+00> : vector<8x8xf32>
    %5 = vector.multi_reduction <add>, %3, %cst [2] : vector<8x8x256xf32> to vector<8x8xf32>
    %6 = arith.addf %4, %5 : vector<8x8xf32>
    %c0_5 = arith.constant 0 : index
    %c0_6 = arith.constant 0 : index
    %7 = vector.load %arg6[%c0_5, %c0_6] : memref<8x8xf32, #tpu.memory_space<vmem>>, vector<8x8xf32>
    tpu.vector_store %arg6[%c0_5, %c0_6], %6 {strides = array<i32>} : memref<8x8xf32, #tpu.memory_space<vmem>>, vector<8x8xf32>,
    %c0_i32_7 = arith.constant 0 : i32
    %8 = arith.cmpi eq, %arg1, %c0_i32_7 : i32
    %9 = arith.extui %8 : i1 to i32
    %c0_i32_8 = arith.constant 0 : i32
    %10 = arith.cmpi ne, %9, %c0_i32_8 : i32
    scf.if %10 {
      %c0_9 = arith.constant 0 : index
      %c0_10 = arith.constant 0 : index
      %11 = vector.load %arg6[%c0_9, %c0_10] : memref<8x8xf32, #tpu.memory_space<vmem>>, vector<8x8xf32>
      %cst_11 = arith.constant 3.906250e-03 : f32
      %12 = vector.broadcast %cst_11 : f32 to vector<8x8xf32>
      %13 = arith.mulf %11, %12 : vector<8x8xf32>
      %c0_12 = arith.constant 0 : index
      %c0_13 = arith.constant 0 : index
      %14 = vector.load %arg3[%c0_12, %c0_13] : memref<8x128xf32, #tpu.memory_space<vmem>>, vector<8x128xf32>
      %cst_14 = arith.constant dense<0.000000e+00> : vector<8x128xf32>
      %15 = tpu.matmul %13, %14, %cst_14 {dimension_numbers = #tpu.dot_dimension_numbers<[1], [0], [0], [1], [0, 0, 1, 1], [], []>} : vector<8x8xf32>, vector<8x128xf32>, vector<8x128xf32> -> vector<8x128xf32>
      %c0_15 = arith.constant 0 : index
      %c0_16 = arith.constant 0 : index
      %16 = vector.load %arg4[%c0_15, %c0_16] : memref<1x128xf32, #tpu.memory_space<vmem>>, vector<1x128xf32>
      %17 = vector.broadcast %16 : vector<1x128xf32> to vector<8x128xf32>
      %18 = arith.addf %15, %17 : vector<8x128xf32>
      %c0_17 = arith.constant 0 : index
      %c0_18 = arith.constant 0 : index
      %19 = vector.load %arg5[%c0_17, %c0_18] : memref<8x128xf32, #tpu.memory_space<vmem>>, vector<8x128xf32>
      tpu.vector_store %arg5[%c0_17, %c0_18], %18 {strides = array<i32>} : memref<8x128xf32, #tpu.memory_space<vmem>>, vector<8x128xf32>,
    } else {
    }
    return
  }
  func.func @transform_0(%arg0: i32, %arg1: i32) -> (i32, i32, i32) {
    %c0_i32 = arith.constant 0 : i32
    %c0_i32_0 = arith.constant 0 : i32
    return %arg0, %c0_i32, %arg1 : i32, i32, i32
  }
  func.func @transform_1(%arg0: i32, %arg1: i32) -> (i32, i32) {
    %c0_i32 = arith.constant 0 : i32
    %c0_i32_0 = arith.constant 0 : i32
    %c0_i32_1 = arith.constant 0 : i32
    return %c0_i32, %c0_i32_0 : i32, i32
  }
  func.func @transform_2(%arg0: i32, %arg1: i32) -> (i32, i32) {
    %c0_i32 = arith.constant 0 : i32
    %c0_i32_0 = arith.constant 0 : i32
    %c0_i32_1 = arith.constant 0 : i32
    return %c0_i32, %c0_i32_0 : i32, i32
  }
  func.func @transform_3(%arg0: i32, %arg1: i32) -> (i32, i32) {
    %c0_i32 = arith.constant 0 : i32
    %c0_i32_0 = arith.constant 0 : i32
    return %arg0, %c0_i32 : i32, i32
  }
}

</mosaic_0001>

<bundles_post_ra>
// kernel: tpu_custom_call.1
= control target key start
LH: loop header
LB: loop body
LE: loop exit
PB: predicated region body
PF: predicated region fallthrough
CT: control target
= control target key end

     0   :  { %8 = vsyncpa [#allocation4], 0  ;;  %s307_s0 = inlined_call_operand.hbm [shape: f32[8,8,256], index: 0, kind: input, shape index: {}]   ;;  %s308_s1 = inlined_call_operand.hbm [shape: f32[8,128], index: 1, kind: input, shape index: {}]   ;;  %s309_s2 = inlined_call_operand.vmem [shape: f32[1,128], index: 2, kind: input, shape index: {}]   ;;  %s310_s3 = inlined_call_operand.hbm [shape: f32[8,128], index: 3, kind: output, shape index: {}]  }
   0x1   :  { %9 = vsyncpa [#allocation7], 0 }
   0x2   :  { %10 = vsyncpa [#allocation5], 0  ;;  %s15_s14 = sshll.u32 %s307_s0, 4  ;;  %s266_s15 = smov [#allocation3]   ;;  %s16_s14 = int_to_ptr.hbm [resolvable:$true] %s15_s14 }
   0x3   :  { %s17_s16 = sshll.u32 %s266_s15, 4  ;;  %s29_s19 = sshll.u32 %s308_s1, 4  ;;  %s18_s16 = int_to_ptr.vmem [resolvable:$true] %s17_s16  ;;  %s30_s19 = int_to_ptr.hbm [resolvable:$true] %s29_s19 }
   0x4   :  { %s267_s20 = smov 256   ;;  %s268_s21 = smov 16  }
   0x5   :  { %23 = dma.hbm_to_vmem [thread:$0]  %s16_s14, 2048, %s18_s16, [#allocation4], %s267_s20, %s267_s20, %s268_s21  }
   0x6   :  { %s269_s22 = smov [#allocation6]  }
   0x7   :  { %s31_s23 = sshll.u32 %s269_s22, 4  ;;  %s32_s23 = int_to_ptr.vmem [resolvable:$true] %s31_s23 }
   0x8   :  { %34 = dma.hbm_to_vmem [thread:$0]  %s30_s19, 128, %s32_s23, [#allocation7]  }
   0x9   :  { %260 = dma.done.wait [#allocation4], 2048  }
   0xa   :  { %261 = vsyncadd [#allocation4], 4294965248 }
   0xb   :  { %262 = dma.done.wait [#allocation7], 128  }
   0xc   :  { %263 = vsyncadd [#allocation7], 4294967168  ;;  %v51_v0 = vld [vmem:[#allocation3] sm:$0xff]  ;;  %v52_v1 = vld [vmem:[#allocation3 + $0x8] sm:$0xff]  ;;  %vm49_vm0 = vcmask 64512   ;;  %v270_v24 = vmov 0.0   ;;  %v100_v27 = vlaneseq }
   0xd   :  { %v55_v2 = vld [vmem:[#allocation3 + $0x20] sm:$0xff]  ;;  %v68_v3 = vadd.f32 %v52_v1, %v51_v0  ;;  %v56_v4 = vld [vmem:[#allocation3 + $0x28] sm:$0xff]  ;;  %v53_v9 = vld [vmem:[#allocation3 + $0x10] sm:$0xff]  ;;  %50 = vst.msk [vmem:[#allocation2] sm:$0xff] %vm49_vm0, %v270_v24  ;;  %vm110_vm1 = vcmask 1041409   ;;  %vm112_vm2 = vcmask 1042434  }
   0xe   :  { %v59_v5 = vld [vmem:[#allocation3 + $0x40] sm:$0xff]  ;;  %v60_v6 = vld [vmem:[#allocation3 + $0x48] sm:$0xff]  ;;  %v74_v7 = vadd.f32 %v56_v4, %v55_v2  ;;  %v54_v10 = vld [vmem:[#allocation3 + $0x18] sm:$0xff]  ;;  %v101_v30 = vand.u32 127, %v100_v27  ;;  %vm114_vm3 = vcmask 1043459   ;;  %vm116_vm4 = vcmask 1044484  }
   0xf   :  { %v80_v8 = vadd.f32 %v60_v6, %v59_v5  ;;  %69 = vadd.xlane.f32.xlu0 %v68_v3  ;;  %v57_v11 = vld [vmem:[#allocation3 + $0x30] sm:$0xff]  ;;  %v58_v12 = vld [vmem:[#allocation3 + $0x38] sm:$0xff]  ;;  %v71_v15 = vadd.f32 %v54_v10, %v53_v9  ;;  %v63_v18 = vld [vmem:[#allocation3 + $0x60] sm:$0xff]  ;;  %vm118_vm5 = vcmask 1045509   ;;  %vm120_vm6 = vcmask 1046534   ;;  %s271_s24 = smov [#allocation8]  }
  0x10   :  { %75 = vadd.xlane.f32.xlu1 %v74_v7  ;;  %v61_v13 = vld [vmem:[#allocation3 + $0x50] sm:$0xff]  ;;  %v62_v14 = vld [vmem:[#allocation3 + $0x58] sm:$0xff]  ;;  %v77_v16 = vadd.f32 %v58_v12, %v57_v11  ;;  %v64_v19 = vld [vmem:[#allocation3 + $0x68] sm:$0xff]  ;;  %vm122_vm7 = vcmask 1047559   ;;  %s167_s25 = sshll.u32 %s271_s24, 4  ;;  %s169_s28 = sshll.u32 %s310_s3, 4  ;;  %s168_s25 = int_to_ptr.vmem [resolvable:$true] %s167_s25  ;;  %s170_s28 = int_to_ptr.hbm [resolvable:$true] %s169_s28 }
  0x11   :  { %81 = vadd.xlane.f32.xlu2 %v80_v8  ;;  %v83_v17 = vadd.f32 %v62_v14, %v61_v13  ;;  %v65_v20 = vld [vmem:[#allocation3 + $0x70] sm:$0xff]  ;;  %v66_v21 = vld [vmem:[#allocation3 + $0x78] sm:$0xff]  ;;  %v86_v22 = vadd.f32 %v64_v19, %v63_v18  ;;  %v133_v25 = vld [vmem:[#allocation6] sm:$0xff] }
  0x12   :  { %v89_v23 = vadd.f32 %v66_v21, %v65_v20  ;;  %156 = vmatpush.msra.mxu0 %v133_v25  ;;  %v187_v55 = vld [vmem:[%s309_s2] ss:$0 sm:$0xff] }
  0x14   :  { %v67_v49 = vld [vmem:[#allocation2] sm:$0xff] }
  0x17   :  { %72 = vadd.xlane.f32.xlu0 %v71_v15 }
  0x18   :  { %78 = vadd.xlane.f32.xlu1 %v77_v16 }
  0x19   :  { %84 = vadd.xlane.f32.xlu2 %v83_v17 }
  0x1f   :  { %87 = vadd.xlane.f32.xlu0 %v86_v22 }
  0x20   :  { %90 = vadd.xlane.f32.xlu1 %v89_v23 }
  0x82   :  { %v70_v26 = vpop.xlane.xlu0 %69 }
  0x83   :  { %v76_v28 = vpop.xlane.xlu1 %75  ;;  %v102_v32 = vperm.slane %v70_v26, %v101_v30 }
  0x84   :  { %v82_v29 = vpop.xlane.xlu2 %81  ;;  %v104_v35 = vperm.slane %v76_v28, %v101_v30 }
  0x85   :  { %v106_v40 = vperm.slane %v82_v29, %v101_v30 }
  0x8a   :  { %v73_v31 = vpop.xlane.xlu0 %72 }
  0x8b   :  { %v103_v33 = vperm.slane %v73_v31, %v101_v30  ;;  %v79_v34 = vpop.xlane.xlu1 %78 }
  0x8c   :  { %v105_v36 = vperm.slane %v79_v34, %v101_v30  ;;  %v85_v38 = vpop.xlane.xlu2 %84 }
  0x8d   :  { %v111_v37 = vsel %vm110_vm1, %v103_v33, %v102_v32  ;;  %v107_v42 = vperm.slane %v85_v38, %v101_v30 }
  0x8e   :  { %v113_v39 = vsel %vm112_vm2, %v104_v35, %v111_v37 }
  0x8f   :  { %v115_v41 = vsel %vm114_vm3, %v105_v36, %v113_v39 }
  0x90   :  { %v117_v43 = vsel %vm116_vm4, %v106_v40, %v115_v41 }
  0x91   :  { %v119_v47 = vsel %vm118_vm5, %v107_v42, %v117_v43 }
  0x92   :  { %v88_v44 = vpop.xlane.xlu0 %87 }
  0x93   :  { %v108_v45 = vperm.slane %v88_v44, %v101_v30  ;;  %v91_v46 = vpop.xlane.xlu1 %90 }
  0x94   :  { %v109_v48 = vperm.slane %v91_v46, %v101_v30 }
  0x95   :  { %v121_v50 = vsel %vm120_vm6, %v108_v45, %v119_v47 }
  0x96   :  { %v123_v51 = vsel %vm122_vm7, %v109_v48, %v121_v50 }
  0x97   :  { %v125_v52 = vadd.f32 %v123_v51, %v67_v49 }
  0x99   :  { %127 = vst.msk [vmem:[#allocation2] sm:$0xff] %vm49_vm0, %v125_v52 }
  0xa0   :  { %v131_v53 = vld [vmem:[#allocation2] sm:$0xff] }
  0xa1   :  { %v132_v54 = vmul.f32 0.00390625, %v131_v53 }
  0xa3   :  { %180 = vmatmul.msk.f32.vlgmr.msra.gmra.mxu0 %vm49_vm0, %v132_v54 }
 0x120   :  { %v158_v56 = vpop.f32.mrf.mxu0 }
 0x121   :  { %v159_v57 = vadd.f32 %v187_v55, %v158_v56 }
 0x123   :  { %161 = vst [vmem:[#allocation8] sm:$0xff] %v159_v57 }
 0x124   :  { %172 = dma.vmem_to_hbm [thread:$0]  %s168_s25, 128, %s170_s28, [#allocation5]  }
 0x125   :  { %264 = dma.done.wait [#allocation5], 128  }
 0x126   :  { %265 = vsyncadd [#allocation5], 4294967168 }
 0x127   :  { %177 = vsyncpa [#allocation4], 1 }
 0x128   :  { %178 = vsyncpa [#allocation7], 1 }
 0x129   :  { %179 = vsyncpa [#allocation5], 1 }

</bundles_post_ra>
